<compile_context>
chip_gen: v5e
topology: v5e:2x2
jax: 0.10.0
libtpu: 0.0.40
codegen_flags: <defaults>
</compile_context>

<pallas_src>
import jax
import jax.numpy as jnp
import numpy as np
from jax.experimental import pallas as pl
from jax.experimental.pallas import tpu as pltpu


def _tab_encoding_kernel(row_ref, col_ref, tlm_ref, wx_ref, wt_ref, br_ref, out_ref):
    """One grid step = one (batch, row-tile, col-tile) block of the L x L table.

    Inputs arrive lane-packed (G column positions per matmul row):
      row_ref : (1, TI,        G*H)  Row_i = S_i@W1 + b1, tiled G times along lanes
      col_ref : (1, TJ//G,     G*H)  Col_j = S_j@W2, G consecutive j packed per row
      tlm_ref : (1, TI, TJ//G, G*E)  Tlm, G consecutive j packed per row (bf16)
      wx_ref  : (G*H, G*H)           block-diag(Wrx), bf16
      wt_ref  : (G*E, G*H)           block-diag(Wrt), bf16
      br_ref  : (1, G*H)             reduce bias tiled G times, f32
      out_ref : (1, TI, TJ//G, G*H)  lane-dense packed output (bf16)
    """
    row = row_ref[0]                                   # (TI, GH)
    col = col_ref[0]                                   # (TJG, GH)
    tlm = tlm_ref[0]                                   # (TI, TJG, GE)
    TI, GH = row.shape
    TJG = col.shape[0]
    GE = tlm.shape[-1]

    # CatReduce + ReLU, already lane-packed:
    #   x[i, jg, g*H+k] = relu(Row[i,k] + Col[jg*G+g, k])
    x = jnp.maximum(row[:, None, :] + col[None, :, :], 0)          # (TI, TJG, GH)

    # reduce_X + ReLU: block-diagonal weights keep the packed lane layout, so the
    # matmul result is already in the lane-dense output layout (no repack, no
    # sub-128-lane concatenate).  f32 accumulation on the MXU.
    x2 = x.reshape(TI * TJG, GH).astype(wx_ref.dtype)
    t2 = tlm.reshape(TI * TJG, GE)
    y = jnp.dot(x2, wx_ref[...], preferred_element_type=jnp.float32)
    y = y + jnp.dot(t2, wt_ref[...], preferred_element_type=jnp.float32)
    y = jnp.maximum(y + br_ref[...], 0.0)                           # (TI*TJG, GH) f32

    out_ref[0] = y.reshape(TI, TJG, GH).astype(out_ref.dtype)


def _round_up(x, m):
    return -(-x // m) * m


def _choose_tiling(L, G):
    """Pad L and pick row/col tile sizes.

    Tiles are multiples of 8 (and of G along the column axis); no silent
    tile = L fallback for awkward L -- we pad instead.
    """
    if L <= 256:
        Lp = _round_up(L, max(8, G))
        return Lp, Lp, Lp
    Lp256 = _round_up(L, 256)
    if Lp256 - L <= 64:          # prefer 256 tiles unless that over-pads the table
        return Lp256, 256, 256
    Lp128 = _round_up(L, 128)
    return Lp128, 128, 128


def _is_v5():
    try:
        return "v5" in jax.devices()[0].device_kind.lower()
    except Exception:
        return False


def tab_encoding(S, Tlm, W1, W2, b1, Wrx, Wrt, br, Tstates=None, masks=None,
                 *, group=None, compute_dtype=None):
    """Pallas-backed TabEncoding.forward.

    Returns (T, Tstates).  The externally-injected `mdrnn` module is not defined
    in the source file, so T is the table encoding X that would be fed into it.
    """
    B, L, D = S.shape
    H = W1.shape[1]
    E = Wrt.shape[0]
    assert Tlm.shape == (B, L, L, E)
    assert E > 0  # TODO(synk): extra_hidden_dim == 0 path (skip reduce_X) not implemented.

    v5 = _is_v5()
    if group is None:
        group = 4 if v5 else 8            # fill the 128-wide (v5e) / 256-wide (v6e/v7x) MXU
    if compute_dtype is None:
        compute_dtype = jnp.float32 if v5 else jnp.bfloat16   # bf16 VALU only on v6e/v7x
    G = group

    # TODO(synk): self.mdrnn is an externally-injected MD-RNN module; its recurrence
    # (and the masks_pair = masks[:,:,None] & masks[:,None,:] it consumes) is not
    # reproduced here -- masks is accepted but unused until mdrnn lands.
    del masks

    # Hoisted CatReduce projections: tiny (B, L, H) arrays, computed once in XLA.
    Row = (S @ W1 + b1).astype(compute_dtype)          # (B, L, H)
    Col = (S @ W2).astype(compute_dtype)               # (B, L, H)

    Lp, ti, tj = _choose_tiling(L, G)
    assert tj % G == 0 and Lp % ti == 0 and Lp % tj == 0, (L, Lp, ti, tj, G)

    if Lp != L:
        pad = Lp - L
        Row = jnp.pad(Row, ((0, 0), (0, pad), (0, 0)))
        Col = jnp.pad(Col, ((0, 0), (0, pad), (0, 0)))
        Tlm = jnp.pad(Tlm, ((0, 0), (0, pad), (0, pad), (0, 0)))

    GH, GE = G * H, G * E

    # Lane-packed operands (all reshapes below are contiguous / free):
    Row_t = jnp.tile(Row, (1, 1, G))                               # (B, Lp, G*H)
    Col_p = Col.reshape(B, Lp // G, GH)                            # (B, Lp//G, G*H)
    Tlm_p = Tlm.astype(jnp.bfloat16).reshape(B, Lp, Lp // G, GE)   # (B, Lp, Lp//G, G*E)

    # Block-diagonal reduce weights: one resident MXU weight set for the whole kernel.
    eye = jnp.eye(G, dtype=jnp.float32)
    W_bigx = jnp.kron(eye, Wrx.astype(jnp.float32)).astype(jnp.bfloat16)   # (G*H, G*H)
    W_bigt = jnp.kron(eye, Wrt.astype(jnp.float32)).astype(jnp.bfloat16)   # (G*E, G*H)
    br_big = jnp.tile(br.reshape(1, H).astype(jnp.float32), (1, G))        # (1, G*H)

    grid = (B, Lp // ti, Lp // tj)

    grid_spec = pltpu.PrefetchScalarGridSpec(
        num_scalar_prefetch=0,
        grid=grid,
        in_specs=[
            pl.BlockSpec((1, ti, GH), lambda b, i, j: (b, i, 0)),              # Row (x G lanes)
            pl.BlockSpec((1, tj // G, GH), lambda b, i, j: (b, j, 0)),         # Col (packed)
            pl.BlockSpec((1, ti, tj // G, GE), lambda b, i, j: (b, i, j, 0)),  # Tlm (packed bf16)
            pl.BlockSpec((GH, GH), lambda b, i, j: (0, 0)),                    # blkdiag(Wrx)
            pl.BlockSpec((GE, GH), lambda b, i, j: (0, 0)),                    # blkdiag(Wrt)
            pl.BlockSpec((1, GH), lambda b, i, j: (0, 0)),                     # bias (x G lanes)
        ],
        # Lane-dense packed output slab; reshaped to (B, L, L, H) outside.
        out_specs=pl.BlockSpec((1, ti, tj // G, GH), lambda b, i, j: (b, i, j, 0)),
        # TODO(synk): on v5e, pipeline_mode=pl.Buffered(3) on the Tlm/out specs can
        # hide DMA jitter (128 MiB VMEM headroom); left at the default 2 for safety.
    )

    out = pl.pallas_call(
        _tab_encoding_kernel,
        out_shape=jax.ShapeDtypeStruct((B, Lp, Lp // G, GH), jnp.bfloat16),
        grid_spec=grid_spec,
        compiler_params=pltpu.CompilerParams(
            # Every grid point writes a distinct output tile -> all axes parallel
            # (row/col tile axes give megacore sharding even at B=1).
            dimension_semantics=("parallel", "parallel", "parallel"),
            # Sized against v7x's 64 MiB VMEM; 256-tiles + double buffering fit easily.
            vmem_limit_bytes=48 * 1024 * 1024,
        ),
    )(Row_t, Col_p, Tlm_p, W_bigx, W_bigt, br_big)

    X = out.reshape(B, Lp, Lp, H)[:, :L, :L, :]

    # TODO(synk): mdrnn recurrence not reproduced; return the table encoding X.
    T = X
    return T, Tstates


def _reference(S, Tlm, W1, W2, b1, Wrx, Wrt, br):
    row = S @ W1 + b1
    col = S @ W2
    x = jax.nn.relu(row[:, :, None, :] + col[:, None, :, :])
    y = jnp.einsum('bijh,ho->bijo', x, Wrx) + jnp.einsum('bije,eo->bijo', Tlm, Wrt) + br
    return jax.nn.relu(y)


if __name__ == "__main__":
    # Small shapes consistent with the module:
    #   emb_dim = hidden_dim = 32, head_emb_dim (extra_hidden_dim) = 16
    B, L, D, H, E = 2, 8, 32, 32, 16

    key = jax.random.PRNGKey(0)
    ks = jax.random.split(key, 6)

    S = jax.random.normal(ks[0], (B, L, D), dtype=jnp.float32)
    Tlm = jax.random.normal(ks[1], (B, L, L, E), dtype=jnp.float32)
    masks = jnp.ones((B, L), dtype=bool).at[1, 6:].set(False)

    # Deterministic parameter init (nn.Linear-style uniform bounds).
    k_cat = 1.0 / (2 * D) ** 0.5
    W_cat = jax.random.uniform(ks[2], (2 * D, H), jnp.float32, -k_cat, k_cat)
    W1, W2 = W_cat[:D], W_cat[D:]
    b1 = jax.random.uniform(ks[3], (1, H), jnp.float32, -k_cat, k_cat)

    k_red = 1.0 / (H + E) ** 0.5
    W_red = jax.random.uniform(ks[4], (H + E, H), jnp.float32, -k_red, k_red)
    Wrx, Wrt = W_red[:H], W_red[H:]
    br = jax.random.uniform(ks[5], (1, H), jnp.float32, -k_red, k_red)

    T, Tstates = tab_encoding(S, Tlm, W1, W2, b1, Wrx, Wrt, br,
                              Tstates=None, masks=masks)
    T = jax.block_until_ready(T)

    ref = _reference(S, Tlm, W1, W2, b1, Wrx, Wrt, br)
    # bf16 I/O + bf16 MXU operands (f32 accumulation): loosened tolerance vs f32 ref.
    np.testing.assert_allclose(np.asarray(T.astype(jnp.float32)),
                               np.asarray(ref), rtol=3e-2, atol=3e-2)

    print("KERNEL_OK")
</pallas_src>

<mosaic_0001>
module attributes {stable_mosaic.version = 11 : i64} {
  func.func @_tab_encoding_kernel(%arg0: i32, %arg1: i32, %arg2: i32, %arg3: memref<1x8x256xbf16, #tpu.memory_space<vmem>>, %arg4: memref<1x1x256xbf16, #tpu.memory_space<vmem>>, %arg5: memref<1x8x1x128xbf16, #tpu.memory_space<vmem>>, %arg6: memref<256x256xbf16, #tpu.memory_space<vmem>>, %arg7: memref<128x256xbf16, #tpu.memory_space<vmem>>, %arg8: memref<1x256xf32, #tpu.memory_space<vmem>>, %arg9: memref<1x8x1x256xbf16, #tpu.memory_space<vmem>>) attributes {dimension_semantics = [#tpu.dimension_semantics<parallel>, #tpu.dimension_semantics<parallel>, #tpu.dimension_semantics<parallel>], iteration_bounds = array<i64: 2, 1, 1>, scalar_prefetch = 0 : i64, scratch_operands = 0 : i64, tpu.core_type = #tpu.core_type<tc>, window_params = [{transform_indices = @transform_0, window_bounds = array<i64: 1, 8, 256>}, {transform_indices = @transform_1, window_bounds = array<i64: 1, 1, 256>}, {transform_indices = @transform_2, window_bounds = array<i64: 1, 8, 1, 128>}, {pipeline_mode = #tpu.pipeline_mode<synchronous>, transform_indices = @transform_3, window_bounds = array<i64: 256, 256>}, {pipeline_mode = #tpu.pipeline_mode<synchronous>, transform_indices = @transform_4, window_bounds = array<i64: 128, 256>}, {pipeline_mode = #tpu.pipeline_mode<synchronous>, transform_indices = @transform_5, window_bounds = array<i64: 1, 256>}, {transform_indices = @transform_6, window_bounds = array<i64: 1, 8, 1, 256>}]} {
    %c0 = arith.constant 0 : index
    %c0_0 = arith.constant 0 : index
    %c0_1 = arith.constant 0 : index
    %0 = vector.load %arg3[%c0, %c0_0, %c0_1] : memref<1x8x256xbf16, #tpu.memory_space<vmem>>, vector<1x8x256xbf16>
    %1 = vector.shape_cast %0 : vector<1x8x256xbf16> to vector<8x256xbf16>
    %c0_2 = arith.constant 0 : index
    %c0_3 = arith.constant 0 : index
    %c0_4 = arith.constant 0 : index
    %2 = vector.load %arg4[%c0_2, %c0_3, %c0_4] : memref<1x1x256xbf16, #tpu.memory_space<vmem>>, vector<1x1x256xbf16>
    %3 = vector.shape_cast %2 : vector<1x1x256xbf16> to vector<1x256xbf16>
    %c0_5 = arith.constant 0 : index
    %c0_6 = arith.constant 0 : index
    %c0_7 = arith.constant 0 : index
    %c0_8 = arith.constant 0 : index
    %4 = vector.load %arg5[%c0_5, %c0_6, %c0_7, %c0_8] : memref<1x8x1x128xbf16, #tpu.memory_space<vmem>>, vector<1x8x1x128xbf16>
    %5 = vector.shape_cast %4 : vector<1x8x1x128xbf16> to vector<8x1x128xbf16>
    %6 = vector.shape_cast %1 : vector<8x256xbf16> to vector<8x1x256xbf16>
    %7 = vector.shape_cast %3 : vector<1x256xbf16> to vector<1x1x256xbf16>
    %8 = vector.broadcast %7 : vector<1x1x256xbf16> to vector<8x1x256xbf16>
    %9 = arith.addf %6, %8 : vector<8x1x256xbf16>
    %cst = arith.constant 0.000000e+00 : bf16
    %10 = vector.broadcast %cst : bf16 to vector<8x1x256xbf16>
    %11 = arith.maximumf %9, %10 : vector<8x1x256xbf16>
    %12 = vector.shape_cast %11 : vector<8x1x256xbf16> to vector<8x256xbf16>
    %13 = vector.shape_cast %5 : vector<8x1x128xbf16> to vector<8x128xbf16>
    %c0_9 = arith.constant 0 : index
    %c0_10 = arith.constant 0 : index
    %14 = vector.load %arg6[%c0_9, %c0_10] : memref<256x256xbf16, #tpu.memory_space<vmem>>, vector<256x256xbf16>
    %cst_11 = arith.constant dense<0.000000e+00> : vector<8x256xf32>
    %15 = tpu.matmul %12, %14, %cst_11 {dimension_numbers = #tpu.dot_dimension_numbers<[1], [0], [0], [1], [0, 0, 1, 1], [], []>} : vector<8x256xbf16>, vector<256x256xbf16>, vector<8x256xf32> -> vector<8x256xf32>
    %c0_12 = arith.constant 0 : index
    %c0_13 = arith.constant 0 : index
    %16 = vector.load %arg7[%c0_12, %c0_13] : memref<128x256xbf16, #tpu.memory_space<vmem>>, vector<128x256xbf16>
    %cst_14 = arith.constant dense<0.000000e+00> : vector<8x256xf32>
    %17 = tpu.matmul %13, %16, %cst_14 {dimension_numbers = #tpu.dot_dimension_numbers<[1], [0], [0], [1], [0, 0, 1, 1], [], []>} : vector<8x128xbf16>, vector<128x256xbf16>, vector<8x256xf32> -> vector<8x256xf32>
    %18 = arith.addf %15, %17 : vector<8x256xf32>
    %c0_15 = arith.constant 0 : index
    %c0_16 = arith.constant 0 : index
    %19 = vector.load %arg8[%c0_15, %c0_16] : memref<1x256xf32, #tpu.memory_space<vmem>>, vector<1x256xf32>
    %20 = vector.broadcast %19 : vector<1x256xf32> to vector<8x256xf32>
    %21 = arith.addf %18, %20 : vector<8x256xf32>
    %cst_17 = arith.constant 0.000000e+00 : f32
    %22 = vector.broadcast %cst_17 : f32 to vector<8x256xf32>
    %23 = arith.maximumf %21, %22 : vector<8x256xf32>
    %24 = vector.shape_cast %23 : vector<8x256xf32> to vector<8x1x256xf32>
    %25 = arith.truncf %24 : vector<8x1x256xf32> to vector<8x1x256xbf16>
    %c0_18 = arith.constant 0 : index
    %c0_19 = arith.constant 0 : index
    %c0_20 = arith.constant 0 : index
    %c0_21 = arith.constant 0 : index
    %26 = vector.load %arg9[%c0_18, %c0_19, %c0_20, %c0_21] : memref<1x8x1x256xbf16, #tpu.memory_space<vmem>>, vector<1x8x1x256xbf16>
    %27 = vector.shape_cast %26 : vector<1x8x1x256xbf16> to vector<8x1x256xbf16>
    %28 = vector.shape_cast %25 : vector<8x1x256xbf16> to vector<1x8x1x256xbf16>
    tpu.vector_store %arg9[%c0_18, %c0_19, %c0_20, %c0_21], %28 {strides = array<i32>} : memref<1x8x1x256xbf16, #tpu.memory_space<vmem>>, vector<1x8x1x256xbf16>,
    return
  }
  func.func @transform_0(%arg0: i32, %arg1: i32, %arg2: i32) -> (i32, i32, i32) {
    %c0_i32 = arith.constant 0 : i32
    %c0_i32_0 = arith.constant 0 : i32
    return %arg0, %arg1, %c0_i32 : i32, i32, i32
  }
  func.func @transform_1(%arg0: i32, %arg1: i32, %arg2: i32) -> (i32, i32, i32) {
    %c0_i32 = arith.constant 0 : i32
    %c0_i32_0 = arith.constant 0 : i32
    return %arg0, %arg2, %c0_i32 : i32, i32, i32
  }
  func.func @transform_2(%arg0: i32, %arg1: i32, %arg2: i32) -> (i32, i32, i32, i32) {
    %c0_i32 = arith.constant 0 : i32
    %c0_i32_0 = arith.constant 0 : i32
    return %arg0, %arg1, %arg2, %c0_i32 : i32, i32, i32, i32
  }
  func.func @transform_3(%arg0: i32, %arg1: i32, %arg2: i32) -> (i32, i32) {
    %c0_i32 = arith.constant 0 : i32
    %c0_i32_0 = arith.constant 0 : i32
    %c0_i32_1 = arith.constant 0 : i32
    return %c0_i32, %c0_i32_0 : i32, i32
  }
  func.func @transform_4(%arg0: i32, %arg1: i32, %arg2: i32) -> (i32, i32) {
    %c0_i32 = arith.constant 0 : i32
    %c0_i32_0 = arith.constant 0 : i32
    %c0_i32_1 = arith.constant 0 : i32
    return %c0_i32, %c0_i32_0 : i32, i32
  }
  func.func @transform_5(%arg0: i32, %arg1: i32, %arg2: i32) -> (i32, i32) {
    %c0_i32 = arith.constant 0 : i32
    %c0_i32_0 = arith.constant 0 : i32
    %c0_i32_1 = arith.constant 0 : i32
    return %c0_i32, %c0_i32_0 : i32, i32
  }
  func.func @transform_6(%arg0: i32, %arg1: i32, %arg2: i32) -> (i32, i32, i32, i32) {
    %c0_i32 = arith.constant 0 : i32
    %c0_i32_0 = arith.constant 0 : i32
    return %arg0, %arg1, %arg2, %c0_i32 : i32, i32, i32, i32
  }
}

</mosaic_0001>

<bundles_post_ra>
// kernel: tpu_custom_call.1
= control target key start
LH: loop header
LB: loop body
LE: loop exit
PB: predicated region body
PF: predicated region fallthrough
CT: control target
= control target key end

     0   :  { %11 = vsyncpa [#allocation3], 0  ;;  %s2147_s0 = inlined_call_operand.vmem [shape: bf16[2,8,256], index: 0, kind: input, shape index: {}]   ;;  %s2148_s1 = inlined_call_operand.vmem [shape: bf16[2,1,256], index: 1, kind: input, shape index: {}]   ;;  %s2149_s2 = inlined_call_operand.vmem [shape: bf16[2,8,1,128], index: 2, kind: input, shape index: {}]   ;;  %s2150_s3 = inlined_call_operand.hbm [shape: bf16[256,256], index: 3, kind: input, shape index: {}]   ;;  %s2151_s4 = inlined_call_operand.hbm [shape: bf16[128,256], index: 4, kind: input, shape index: {}]   ;;  %s2152_s5 = inlined_call_operand.vmem [shape: f32[1,256], index: 5, kind: input, shape index: {}]   ;;  %s2153_s6 = inlined_call_operand.vmem [shape: bf16[2,8,1,256], index: 6, kind: output, shape index: {}]  }
   0x1   :  { %12 = vsyncpa [#allocation5], 0  ;;  %s1872_s21 = smov 0   ;;  %s1874_s22 = smov 0  }
   0x2   :  { %s1876_s23 = smov 0  }
   0x3 LB: > { %s1415_s24 = sadd.s32 4294967295, %s1830_s23   ;;  %s37_s25 = sadd.s32 1, %s1826_s22  ;;  %s1830_s23 = sphi %s1876_s23, %s18_s23   ;;  %s1826_s22 = sphi %s1874_s22, %s2163_s22   ;;  %s1822_s21 = sphi %s1872_s21, %s2162_s21  }
   0x4   : > { %p39_p0 = scmp.ge.s32.totalorder %s37_s25, 2  ;;  %p1417_p1 = scmp.ge.s32.totalorder %s1830_s23, 1 }
   0x5   : > { %p221_p2 = scmp.lt.s32.totalorder %s1830_s23, 3  ;;  %p1897_p4 = scmp.eq.s32.totalorder %s1415_s24, 0 }
   0x6   : > { %s2165_s25 = smov (%p39_p0, %s37_s25), 0  ;;  %s232_s30 = sshll.u32 %s2150_s3, 4  ;;  %s233_s30 = int_to_ptr.hbm [resolvable:$true] %s232_s30 }
   0x7   : > { %p1893_p3 = pnand %p1417_p1, %p221_p2  ;;  %s1832_s7 = smov [#allocation2]  }
   0x8   : > { %s234_s8 = sshll.u32 %s1832_s7, 4  ;;  %s246_s11 = sshll.u32 %s2151_s4, 4  ;;  %s235_s8 = int_to_ptr.vmem [resolvable:$true] %s234_s8  ;;  %s247_s11 = int_to_ptr.hbm [resolvable:$true] %s246_s11 }
   0x9   : > { %p1700_p5 = pneg %p1893_p3  ;;  %s1833_s12 = smov 128  }
   0xa   : > { %s1834_s13 = smov 8   ;;  %s1835_s14 = smov [#allocation4]  }
   0xb   : > { %p1701_p6 = pnand %p1897_p4, %p1700_p5  ;;  %s248_s15 = sshll.u32 %s1835_s14, 4  ;;  %s249_s15 = int_to_ptr.vmem [resolvable:$true] %s248_s15 }
   0xc   : > { %305 = sbr.rel (%p1893_p3) target bundleno = 294 (0x126), region = 44 }
   0xd   : > { %1703 = dma.hbm_to_vmem [thread:$0]  (!%p1701_p6), %s233_s30, 4096, %s235_s8, [#allocation3], %s1833_s12, %s1833_s12, %s1834_s13  }
   0xe   : > { %1706 = dma.hbm_to_vmem [thread:$0]  (!%p1701_p6), %s247_s11, 2048, %s249_s15, [#allocation5], %s1833_s12, %s1833_s12, %s1834_s13  }
  0x11   : > { %1813 = dma.done.wait (%p1897_p4), [#allocation3], 4096  }
  0x12   : > { %1815 = vsyncadd (%p1897_p4), [#allocation3], 4294963200 }
  0x13   : > { %1817 = dma.done.wait (%p1897_p4), [#allocation5], 2048  }
  0x14   : > { %1819 = vsyncadd (%p1897_p4), [#allocation5], 4294965248  ;;  %v1491_v0 = vld [vmem:[#allocation4 + $0x70] sm:$0xf]  ;;  %v1691_v1 = vld [vmem:[#allocation4 + $0x74] sm:$0xf0] }
  0x15   : > { %v1690_v2 = vld [vmem:[#allocation4 + $0x74] sm:$0xf]  ;;  %v1492_v3 = vor.u32 %v1691_v1, %v1491_v0  ;;  %v1493_v4 = vld [vmem:[#allocation4 + $0x78] sm:$0xf0]  ;;  %v1483_v5 = vld [vmem:[#allocation4 + $0x60] sm:$0xf] }
  0x16   : > { %v1689_v6 = vld [vmem:[#allocation4 + $0x64] sm:$0xf0]  ;;  %v1496_v7 = vor.u32 %v1690_v2, %v1493_v4  ;;  %v1688_v8 = vld [vmem:[#allocation4 + $0x64] sm:$0xf]  ;;  %v1485_v9 = vld [vmem:[#allocation4 + $0x68] sm:$0xf0] }
  0x17   : > { %v1571_v10 = vld [vmem:[#allocation2 + $0x70] sm:$0xf]  ;;  %774 = vmatpush.bf16.msra.mxu0 %v1492_v3  ;;  %v1484_v11 = vor.u32 %v1689_v6, %v1483_v5  ;;  %v1659_v12 = vld [vmem:[#allocation2 + $0x74] sm:$0xf0]  ;;  %v1488_v15 = vor.u32 %v1688_v8, %v1485_v9  ;;  %v1686_v17 = vld [vmem:[#allocation4 + $0x54] sm:$0xf] }
  0x18   : > { %v1475_v13 = vld [vmem:[#allocation4 + $0x50] sm:$0xf]  ;;  %v1687_v14 = vld [vmem:[#allocation4 + $0x54] sm:$0xf0]  ;;  %787 = vmatpush.bf16.msra.mxu1 %v1496_v7  ;;  %v1572_v16 = vor.u32 %v1659_v12, %v1571_v10  ;;  %v1477_v18 = vld [vmem:[#allocation4 + $0x58] sm:$0xf0] }
  0x19   : > { %v1635_v19 = vld [vmem:[#allocation2 + $0xf0] sm:$0xf]  ;;  %v1675_v20 = vld [vmem:[#allocation2 + $0xf4] sm:$0xf0]  ;;  %v1563_v21 = vld [vmem:[#allocation2 + $0x60] sm:$0xf]  ;;  %v1476_v25 = vor.u32 %v1687_v14, %v1475_v13  ;;  %v1480_v29 = vor.u32 %v1686_v17, %v1477_v18 }
  0x1a   : > { %v1657_v22 = vld [vmem:[#allocation2 + $0x64] sm:$0xf0]  ;;  %1048 = vmatpush.bf16.msra.mxu2 %v1572_v16  ;;  %v1636_v23 = vor.u32 %v1675_v20, %v1635_v19  ;;  %v1467_v26 = vld [vmem:[#allocation4 + $0x40] sm:$0xf]  ;;  %v1555_v32 = vld [vmem:[#allocation2 + $0x50] sm:$0xf] }
  0x1b   : > { %v1564_v24 = vor.u32 %v1657_v22, %v1563_v21  ;;  %775 = vmatpush.bf16.msra.mxu0 %v1484_v11  ;;  %v1627_v27 = vld [vmem:[#allocation2 + $0xe0] sm:$0xf]  ;;  %v1673_v28 = vld [vmem:[#allocation2 + $0xe4] sm:$0xf0]  ;;  %v1655_v33 = vld [vmem:[#allocation2 + $0x54] sm:$0xf0] }
  0x1c   : > { %788 = vmatpush.bf16.msra.mxu1 %v1488_v15  ;;  %1061 = vmatpush.bf16.msra.mxu3 %v1636_v23  ;;  %v1685_v30 = vld [vmem:[#allocation4 + $0x44] sm:$0xf0]  ;;  %v1628_v31 = vor.u32 %v1673_v28, %v1627_v27  ;;  %v1684_v34 = vld [vmem:[#allocation4 + $0x44] sm:$0xf]  ;;  %v1469_v35 = vld [vmem:[#allocation4 + $0x48] sm:$0xf0]  ;;  %v1556_v36 = vor.u32 %v1655_v33, %v1555_v32 }
  0x1d   : > { %v1619_v37 = vld [vmem:[#allocation2 + $0xd0] sm:$0xf]  ;;  %v1671_v38 = vld [vmem:[#allocation2 + $0xd4] sm:$0xf0]  ;;  %p372_p7 = scmp.lt.s32.totalorder %s1822_s21, 1  ;;  %v1468_v39 = vor.u32 %v1685_v30, %v1467_v26  ;;  %v1472_v42 = vor.u32 %v1684_v34, %v1469_v35  ;;  %vm427_vm0 = vcmask 1040384  }
  0x1e   : > { %1049 = vmatpush.bf16.msra.mxu2 %v1564_v24  ;;  %v1547_v40 = vld [vmem:[#allocation2 + $0x40] sm:$0xf]  ;;  %v1653_v41 = vld [vmem:[#allocation2 + $0x44] sm:$0xf0]  ;;  %v1459_v43 = vld [vmem:[#allocation4 + $0x30] sm:$0xf]  ;;  %v1620_v46 = vor.u32 %v1671_v38, %v1619_v37 }
  0x1f   : > { %776 = vmatpush.bf16.msra.mxu0 %v1476_v25  ;;  %v1683_v44 = vld [vmem:[#allocation4 + $0x34] sm:$0xf0]  ;;  %v1682_v45 = vld [vmem:[#allocation4 + $0x34] sm:$0xf]  ;;  %v1461_v47 = vld [vmem:[#allocation4 + $0x38] sm:$0xf0]  ;;  %v1548_v50 = vor.u32 %v1653_v41, %v1547_v40 }
  0x20   : > { %789 = vmatpush.bf16.msra.mxu1 %v1480_v29  ;;  %1062 = vmatpush.bf16.msra.mxu3 %v1628_v31  ;;  %v1611_v48 = vld [vmem:[#allocation2 + $0xc0] sm:$0xf]  ;;  %v1669_v49 = vld [vmem:[#allocation2 + $0xc4] sm:$0xf0]  ;;  %s2167_s21 = smov (!%p372_p7, %s1822_s21), 1  ;;  %v1460_v51 = vor.u32 %v1683_v44, %v1459_v43  ;;  %v1464_v54 = vor.u32 %v1682_v45, %v1461_v47  ;;  %vm432_vm1 = vcmask 1041409  }
  0x21   : > { %v1539_v52 = vld [vmem:[#allocation2 + $0x30] sm:$0xf]  ;;  %v1651_v53 = vld [vmem:[#allocation2 + $0x34] sm:$0xf0]  ;;  %v1451_v55 = vld [vmem:[#allocation4 + $0x20] sm:$0xf]  ;;  %v1612_v58 = vor.u32 %v1669_v49, %v1611_v48 }
  0x22   : > { %1050 = vmatpush.bf16.msra.mxu2 %v1556_v36  ;;  %v1681_v56 = vld [vmem:[#allocation4 + $0x24] sm:$0xf0]  ;;  %v1680_v57 = vld [vmem:[#allocation4 + $0x24] sm:$0xf]  ;;  %v1453_v59 = vld [vmem:[#allocation4 + $0x28] sm:$0xf0]  ;;  %v1540_v62 = vor.u32 %v1651_v53, %v1539_v52 }
  0x23   : > { %777 = vmatpush.bf16.msra.mxu0 %v1468_v39  ;;  %v1603_v60 = vld [vmem:[#allocation2 + $0xb0] sm:$0xf]  ;;  %v1667_v61 = vld [vmem:[#allocation2 + $0xb4] sm:$0xf0]  ;;  %s1643_s16 = sshll.u32 %s2167_s21, 3  ;;  %s1426_s17 = sshll.u32 %s2167_s21, 1  ;;  %v1452_v1 = vor.u32 %v1681_v56, %v1451_v55  ;;  %v1456_v6 = vor.u32 %v1680_v57, %v1453_v59 }
  0x24   : > { %790 = vmatpush.bf16.msra.mxu1 %v1472_v42  ;;  %1063 = vmatpush.bf16.msra.mxu3 %v1620_v46  ;;  %v1443_v63 = vld [vmem:[#allocation4 + $0x10] sm:$0xf]  ;;  %v1679_v0 = vld [vmem:[#allocation4 + $0x14] sm:$0xf0]  ;;  %v1678_v2 = vld [vmem:[#allocation4 + $0x14] sm:$0xf]  ;;  %v1604_v7 = vor.u32 %v1667_v61, %v1603_v60  ;;  %s380_s20 = scalar_lea.vmem %s2147_s0, %s1643_s16  ;;  %s388_s27 = scalar_lea.vmem %s2148_s1, %s1426_s17 }
  0x25   : > { %v1445_v3 = vld [vmem:[#allocation4 + $0x18] sm:$0xf0]  ;;  %v1531_v4 = vld [vmem:[#allocation2 + $0x20] sm:$0xf]  ;;  %v1649_v5 = vld [vmem:[#allocation2 + $0x24] sm:$0xf0]  ;;  %v1444_v24 = vor.u32 %v1679_v0, %v1443_v63  ;;  %s1972_s30 = scalar_lea.vmem %s2149_s2, %s1643_s16 }
  0x26   : > { %1051 = vmatpush.bf16.msra.mxu2 %v1548_v50  ;;  %v1929_v8 = vld [vmem:[#allocation4] sm:$0xf]  ;;  %v1931_v9 = vld [vmem:[#allocation4 + $0x4] sm:$0xf0]  ;;  %v1933_v10 = vld [vmem:[#allocation4 + $0x4] sm:$0xf]  ;;  %v1532_v20 = vor.u32 %v1649_v5, %v1531_v4  ;;  %v1448_v28 = vor.u32 %v1678_v2, %v1445_v3 }
  0x27   : > { %778 = vmatpush.bf16.msra.mxu0 %v1460_v51  ;;  %v1935_v11 = vld [vmem:[#allocation4 + $0x8] sm:$0xf0]  ;;  %v1595_v12 = vld [vmem:[#allocation2 + $0xa0] sm:$0xf]  ;;  %v1665_v13 = vld [vmem:[#allocation2 + $0xa4] sm:$0xf0]  ;;  %v1436_v33 = vor.u32 %v1931_v9, %v1929_v8 }
  0x28   : > { %791 = vmatpush.bf16.msra.mxu1 %v1464_v54  ;;  %1064 = vmatpush.bf16.msra.mxu3 %v1612_v58  ;;  %v1937_v14 = vld [vmem:[#allocation2 + $0x74] sm:$0xf]  ;;  %v1939_v15 = vld [vmem:[#allocation2 + $0x78] sm:$0xf0]  ;;  %v1523_v18 = vld [vmem:[#allocation2 + $0x10] sm:$0xf]  ;;  %v1596_v29 = vor.u32 %v1665_v13, %v1595_v12  ;;  %v1440_v34 = vor.u32 %v1933_v10, %v1935_v11 }
  0x29   : > { %v1941_v16 = vld [vmem:[#allocation2 + $0xf4] sm:$0xf]  ;;  %v1943_v17 = vld [vmem:[#allocation2 + $0xf8] sm:$0xf0]  ;;  %v1647_v19 = vld [vmem:[#allocation2 + $0x14] sm:$0xf0]  ;;  %v1576_v38 = vor.u32 %v1937_v14, %v1939_v15 }
  0x2a   : > { %1052 = vmatpush.bf16.msra.mxu2 %v1540_v62  ;;  %v1945_v21 = vld [vmem:[#allocation2 + $0x90] sm:$0xf]  ;;  %v1947_v22 = vld [vmem:[#allocation2 + $0x94] sm:$0xf0]  ;;  %v1949_v23 = vld [vmem:[#allocation2 + $0x64] sm:$0xf]  ;;  %v1640_v39 = vor.u32 %v1941_v16, %v1943_v17  ;;  %v1524_v40 = vor.u32 %v1647_v19, %v1523_v18 }
  0x2b   : > { %779 = vmatpush.bf16.msra.mxu0 %v1452_v1  ;;  %v1961_v25 = vld [vmem:[#allocation2 + $0x68] sm:$0xf0]  ;;  %v1963_v26 = vld [vmem:[#allocation2 + $0xe4] sm:$0xf]  ;;  %v1515_v30 = vld [vmem:[#allocation2] sm:$0xf]  ;;  %v1588_v41 = vor.u32 %v1947_v22, %v1945_v21 }
  0x2c   : > { %v1965_v27 = vld [vmem:[#allocation2 + $0xe8] sm:$0xf0]  ;;  %792 = vmatpush.bf16.msra.mxu1 %v1456_v6  ;;  %1065 = vmatpush.bf16.msra.mxu3 %v1604_v7  ;;  %v1645_v31 = vld [vmem:[#allocation2 + $0x4] sm:$0xf0]  ;;  %v1974_v32 = vld [vmem:[#allocation2 + $0x80] sm:$0xf]  ;;  %v1568_v45 = vor.u32 %v1949_v23, %v1961_v25 }
  0x2d   : > { %v1980_v35 = vld [vmem:[#allocation2 + $0x84] sm:$0xf0]  ;;  %v415_v36 = vld [vmem:[%s380_s20] sm:$0xff]  ;;  %v1988_v42 = vld [vmem:[#allocation2 + $0x54] sm:$0xf]  ;;  %v1632_v46 = vor.u32 %v1963_v26, %v1965_v27  ;;  %vm436_vm2 = vcmask 1042434   ;;  %v1516_v50 = vor.u32 %v1645_v31, %v1515_v30 }
  0x2e   : > { %v416_v37 = vld [vmem:[%s388_s27] sm:$0x3]  ;;  %1053 = vmatpush.bf16.msra.mxu2 %v1532_v20  ;;  %v1990_v43 = vld [vmem:[#allocation2 + $0x58] sm:$0xf0]  ;;  %v1997_v48 = vld [vmem:[#allocation2 + $0xd4] sm:$0xf]  ;;  %v1580_v51 = vor.u32 %v1980_v35, %v1974_v32 }
  0x2f   : > { %v417_v44 = vld [vmem:[%s1972_s30] sm:$0x1]  ;;  %780 = vmatpush.bf16.msra.mxu0 %v1444_v24  ;;  %v516_v47 = vunpack.c.l.bf16 %v416_v37  ;;  %v426_v49 = vrot.slane %v415_v36, 3  ;;  %vm440_vm3 = vcmask 1043459   ;;  %v1560_v52 = vor.u32 %v1988_v42, %v1990_v43  ;;  %v1621_v53 = vld [vmem:[#allocation2 + $0xd8] sm:$0xf0] }
  0x30   : > { %793 = vmatpush.bf16.msra.mxu1 %v1448_v28  ;;  %1066 = vmatpush.bf16.msra.mxu3 %v1596_v29  ;;  %635 = vst [vmem:[#allocation1] ss:$9 sm:$0xff] %v417_v44  ;;  %v1624_v62 = vor.u32 %v1997_v48, %v1621_v53  ;;  %v1836_v0 = vmov 286326784   ;;  %v418_v7 = vld [vmem:[%s1972_s30 + $0x1] sm:$0x1]  ;;  %vm681_vm4 = vcmask 1044484  }
  0x31   : > { %v430_v54 = vsel %vm427_vm0, %v415_v36, %v426_v49  ;;  %v433_v55 = vsel %vm432_vm1, %v415_v36, %v426_v49  ;;  %v437_v56 = vsel %vm436_vm2, %v415_v36, %v426_v49  ;;  %v441_v57 = vsel %vm440_vm3, %v415_v36, %v426_v49  ;;  %s1428_s9 = sshll.u32 %s2167_s21, 4 }
  0x32   : > { %1054 = vmatpush.bf16.msra.mxu2 %v1524_v40  ;;  %v435_v58 = vrot.slane %v433_v55, 1  ;;  %v439_v59 = vrot.slane %v437_v56, 2  ;;  %v443_v60 = vrot.slane %v441_v57, 3  ;;  %v445_v61 = vunpack.i.h.s16 %v430_v54  ;;  %v419_v40 = vld [vmem:[%s1972_s30 + $0x2] sm:$0x1]  ;;  %s2076_s12 = scalar_lea.vmem %s2153_s6, %s1428_s9 }
  0x33   : > { %781 = vmatpush.bf16.msra.mxu0 %v1436_v33  ;;  %v1429_v63 = vpack.i.b16 %v430_v54, %v430_v54  ;;  %v461_v1 = vunpack.c.l.s4 %v1836_v0  ;;  %v2008_v2 = vperm.slane %v516_v47, 0  ;;  %v519_v15 = vperm.slane %v516_v47, 2 }
  0x34   : > { %794 = vmatpush.bf16.msra.mxu1 %v1440_v34  ;;  %1067 = vmatpush.bf16.msra.mxu3 %v1588_v41  ;;  %v447_v3 = vunpack.i.h.s16 %v435_v58  ;;  %v449_v4 = vunpack.i.h.s16 %v439_v59  ;;  %v451_v5 = vunpack.i.h.s16 %v443_v60  ;;  %v453_v6 = vpack.i.b16 %v445_v61, %v445_v61 }
  0x35   : > { %v1430_v8 = vpack.i.b16 %v435_v58, %v435_v58  ;;  %v1431_v9 = vpack.i.b16 %v439_v59, %v439_v59  ;;  %v1432_v10 = vpack.i.b16 %v443_v60, %v443_v60  ;;  %v462_v11 = vunpack.c.0.s8 %v461_v1 }
  0x36   : > { %1055 = vmatpush.bf16.msra.mxu2 %v1516_v50  ;;  %v455_v12 = vpack.i.b16 %v447_v3, %v447_v3  ;;  %v457_v13 = vpack.i.b16 %v449_v4, %v449_v4  ;;  %v459_v14 = vpack.i.b16 %v451_v5, %v451_v5  ;;  %vm684_vm5 = vcmask 1045509  }
  0x37   : > { %1074 = vmatpush.bf16.msrb.mxu0 %v1576_v38  ;;  %v463_v16 = vperm.slane %v1429_v63, %v462_v11  ;;  %v467_v17 = vperm.slane %v453_v6, %v462_v11  ;;  %v471_v18 = vperm.slane %v1430_v8, %v462_v11  ;;  %v479_v19 = vperm.slane %v1431_v9, %v462_v11  ;;  %v2011_v20 = vld [vmem:[#allocation1] sm:$0xf] }
  0x38   : > { %1087 = vmatpush.bf16.msrb.mxu1 %v1640_v39  ;;  %1068 = vmatpush.bf16.msra.mxu3 %v1580_v51  ;;  %v475_v21 = vperm.slane %v455_v12, %v462_v11  ;;  %v483_v22 = vperm.slane %v457_v13, %v462_v11  ;;  %v487_v23 = vperm.slane %v1432_v10, %v462_v11  ;;  %vm687_vm6 = vcmask 1046534  }
  0x39   : > { %639 = vst [vmem:[#allocation1] ss:$9 sm:$0xff] %v418_v7  ;;  %v491_v24 = vperm.slane %v459_v14, %v462_v11  ;;  %v500_v25 = vunpack.c.l.bf16 %v463_v16  ;;  %v501_v26 = vunpack.c.h.bf16 %v463_v16  ;;  %v502_v27 = vunpack.c.l.bf16 %v467_v17  ;;  %v420_v14 = vld [vmem:[%s1972_s30 + $0x3] sm:$0x1] }
  0x3a   : > { %v503_v28 = vunpack.c.h.bf16 %v467_v17  ;;  %v504_v29 = vunpack.c.l.bf16 %v471_v18  ;;  %v505_v30 = vunpack.c.h.bf16 %v471_v18  ;;  %v506_v31 = vunpack.c.l.bf16 %v475_v21 }
  0x3b   : > { %1075 = vmatpush.bf16.msrb.mxu0 %v1568_v45  ;;  %v507_v32 = vunpack.c.h.bf16 %v475_v21  ;;  %v508_v33 = vunpack.c.l.bf16 %v479_v19  ;;  %v509_v34 = vunpack.c.h.bf16 %v479_v19  ;;  %v510_v35 = vunpack.c.l.bf16 %v483_v22 }
  0x3c   : > { %1088 = vmatpush.bf16.msrb.mxu1 %v1632_v46  ;;  %v511_v36 = vunpack.c.h.bf16 %v483_v22  ;;  %v512_v37 = vunpack.c.l.bf16 %v487_v23  ;;  %v513_v38 = vunpack.c.h.bf16 %v487_v23  ;;  %v514_v39 = vunpack.c.l.bf16 %v491_v24 }
  0x3d   : > { %v515_v41 = vunpack.c.h.bf16 %v491_v24  ;;  %v522_v42 = vadd.f32 %v2008_v2, %v500_v25  ;;  %v523_v43 = vadd.f32 %v519_v15, %v501_v26  ;;  %v524_v44 = vadd.f32 %v2008_v2, %v502_v27 }
  0x3e   : > { %v525_v45 = vadd.f32 %v519_v15, %v503_v28  ;;  %v526_v46 = vadd.f32 %v2008_v2, %v504_v29  ;;  %v527_v47 = vadd.f32 %v519_v15, %v505_v30  ;;  %v528_v48 = vadd.f32 %v2008_v2, %v506_v31 }
  0x3f   : > { %1076 = vmatpush.bf16.msrb.mxu0 %v1560_v52  ;;  %v529_v49 = vadd.f32 %v519_v15, %v507_v32  ;;  %v530_v50 = vadd.f32 %v2008_v2, %v508_v33  ;;  %v531_v51 = vadd.f32 %v519_v15, %v509_v34  ;;  %v532_v52 = vadd.f32 %v2008_v2, %v510_v35 }
  0x40   : > { %1089 = vmatpush.bf16.msrb.mxu1 %v1624_v62  ;;  %v2020_v53 = vld [vmem:[#allocation1] sm:$0xf]  ;;  %v533_v54 = vadd.f32 %v519_v15, %v511_v36  ;;  %v534_v55 = vadd.f32 %v2008_v2, %v512_v37  ;;  %v535_v56 = vadd.f32 %v519_v15, %v513_v38  ;;  %v536_v57 = vadd.f32 %v2008_v2, %v514_v39 }
  0x41   : > { %643 = vst [vmem:[#allocation1] ss:$9 sm:$0xff] %v419_v40  ;;  %v537_v58 = vadd.f32 %v519_v15, %v515_v41  ;;  %v562_v59 = vmax.f32 %v522_v42, 0.0  ;;  %v563_v60 = vmax.f32 %v523_v43, 0.0  ;;  %v564_v61 = vmax.f32 %v524_v44, 0.0 }
  0x42   : > { %v565_v62 = vmax.f32 %v525_v45, 0.0  ;;  %v566_v63 = vmax.f32 %v526_v46, 0.0  ;;  %v567_v0 = vmax.f32 %v527_v47, 0.0  ;;  %v568_v1 = vmax.f32 %v528_v48, 0.0  ;;  %v421_v44 = vld [vmem:[%s1972_s30 + $0x4] sm:$0x1] }
  0x43   : > { %v569_v3 = vmax.f32 %v529_v49, 0.0  ;;  %v570_v4 = vmax.f32 %v530_v50, 0.0  ;;  %v571_v5 = vmax.f32 %v531_v51, 0.0  ;;  %v572_v6 = vmax.f32 %v532_v52, 0.0 }
  0x44   : > { %v573_v7 = vmax.f32 %v533_v54, 0.0  ;;  %v574_v8 = vmax.f32 %v534_v55, 0.0  ;;  %v575_v9 = vmax.f32 %v535_v56, 0.0  ;;  %v576_v10 = vmax.f32 %v536_v57, 0.0 }
  0x45   : > { %v577_v11 = vmax.f32 %v537_v58, 0.0  ;;  %v578_v2 = vpack.c.bf16 %v563_v60, %v562_v59  ;;  %v579_v12 = vpack.c.bf16 %v565_v62, %v564_v61  ;;  %v580_v13 = vpack.c.bf16 %v567_v0, %v566_v63 }
  0x46   : > { %v581_v15 = vpack.c.bf16 %v569_v3, %v568_v1  ;;  %v582_v16 = vpack.c.bf16 %v571_v5, %v570_v4  ;;  %v583_v17 = vpack.c.bf16 %v573_v7, %v572_v6  ;;  %v584_v18 = vpack.c.bf16 %v575_v9, %v574_v8  ;;  %v1652_v4 = vld [vmem:[#allocation2 + $0x44] sm:$0xf]  ;;  %v1549_v5 = vld [vmem:[#allocation2 + $0x48] sm:$0xf0] }
  0x47   : > { %v585_v19 = vpack.c.bf16 %v577_v11, %v576_v10  ;;  %v808_v21 = vunpack.c.l.b16 %v578_v2  ;;  %v810_v22 = vunpack.c.l.b16 %v579_v12  ;;  %v812_v23 = vunpack.c.l.b16 %v580_v13  ;;  %v1668_v10 = vld [vmem:[#allocation2 + $0xc4] sm:$0xf]  ;;  %v1613_v11 = vld [vmem:[#allocation2 + $0xc8] sm:$0xf0] }
  0x48   : > { %v2025_v24 = vld [vmem:[#allocation1] sm:$0xf]  ;;  %v814_v25 = vunpack.c.l.b16 %v581_v15  ;;  %v816_v26 = vunpack.c.l.b16 %v582_v16  ;;  %v818_v27 = vunpack.c.l.b16 %v583_v17  ;;  %v820_v28 = vunpack.c.l.b16 %v584_v18 }
  0x49   : > { %647 = vst [vmem:[#allocation1] ss:$9 sm:$0xff] %v420_v14  ;;  %v822_v29 = vunpack.c.l.b16 %v585_v19  ;;  %v1497_v30 = vunpack.i.l.s16 %v808_v21  ;;  %v1499_v31 = vunpack.i.l.s16 %v810_v22  ;;  %v1501_v32 = vunpack.i.l.s16 %v812_v23 }
  0x4a   : > { %v1503_v33 = vunpack.i.l.s16 %v814_v25  ;;  %v1505_v34 = vunpack.i.l.s16 %v816_v26  ;;  %v1507_v35 = vunpack.i.l.s16 %v818_v27  ;;  %v1509_v36 = vunpack.i.l.s16 %v820_v28  ;;  %v1650_v25 = vld [vmem:[#allocation2 + $0x34] sm:$0xf]  ;;  %v1541_v26 = vld [vmem:[#allocation2 + $0x38] sm:$0xf0] }
  0x4b   : > { %vm690_vm7 = vcmask 1047559   ;;  %v1511_v37 = vunpack.i.l.s16 %v822_v29  ;;  %v856_v38 = vrot.slane %v1499_v31, 7  ;;  %v858_v39 = vrot.slane %v1501_v32, 6  ;;  %v1666_v29 = vld [vmem:[#allocation2 + $0xb4] sm:$0xf] }
  0x4c   : > { %v860_v40 = vrot.slane %v1503_v33, 5  ;;  %v862_v41 = vrot.slane %v1505_v34, 4  ;;  %v864_v42 = vrot.slane %v1507_v35, 3  ;;  %v866_v43 = vrot.slane %v1509_v36, 2  ;;  %v1648_v35 = vld [vmem:[#allocation2 + $0x24] sm:$0xf] }
  0x4d   : > { %v857_v45 = vsel %vm432_vm1, %v856_v38, %v1497_v30  ;;  %v868_v46 = vrot.slane %v1511_v37, 1  ;;  %v809_v47 = vunpack.c.h.b16 %v578_v2  ;;  %v811_v48 = vunpack.c.h.b16 %v579_v12  ;;  %v1605_v30 = vld [vmem:[#allocation2 + $0xb8] sm:$0xf0]  ;;  %v1533_v37 = vld [vmem:[#allocation2 + $0x28] sm:$0xf0] }
  0x4e   : > { %v859_v49 = vsel %vm436_vm2, %v858_v39, %v857_v45  ;;  %v813_v50 = vunpack.c.h.b16 %v580_v13  ;;  %v815_v51 = vunpack.c.h.b16 %v581_v15  ;;  %v817_v52 = vunpack.c.h.b16 %v582_v16  ;;  %v422_v15 = vld [vmem:[%s1972_s30 + $0x5] sm:$0x1]  ;;  %v1664_v38 = vld [vmem:[#allocation2 + $0xa4] sm:$0xf] }
  0x4f   : > { %v861_v54 = vsel %vm440_vm3, %v860_v40, %v859_v49  ;;  %v819_v55 = vunpack.c.h.b16 %v583_v17  ;;  %v821_v56 = vunpack.c.h.b16 %v584_v18  ;;  %v823_v57 = vunpack.c.h.b16 %v585_v19  ;;  %v1597_v40 = vld [vmem:[#allocation2 + $0xa8] sm:$0xf0]  ;;  %v1589_v49 = vld [vmem:[#allocation2 + $0x98] sm:$0xf0] }
  0x50   : > { %v2031_v58 = vld [vmem:[#allocation1] sm:$0xf]  ;;  %v863_v59 = vsel %vm681_vm4, %v862_v41, %v861_v54  ;;  %v1498_v60 = vunpack.i.l.s16 %v809_v47  ;;  %v1500_v61 = vunpack.i.l.s16 %v811_v48  ;;  %v1502_v62 = vunpack.i.l.s16 %v813_v50  ;;  %v1525_v47 = vld [vmem:[#allocation2 + $0x18] sm:$0xf0]  ;;  %v1662_v48 = vld [vmem:[#allocation2 + $0x94] sm:$0xf] }
  0x51   : > { %651 = vst [vmem:[#allocation1] ss:$9 sm:$0xff] %v421_v44  ;;  %v865_v63 = vsel %vm684_vm5, %v864_v42, %v863_v59  ;;  %v1504_v0 = vunpack.i.l.s16 %v815_v51  ;;  %v1506_v1 = vunpack.i.l.s16 %v817_v52  ;;  %v1508_v3 = vunpack.i.l.s16 %v819_v55  ;;  %v423_v50 = vld [vmem:[%s1972_s30 + $0x6] sm:$0x1]  ;;  %v1517_v59 = vld [vmem:[#allocation2 + $0x8] sm:$0xf0] }
  0x52   : > { %v867_v6 = vsel %vm687_vm6, %v866_v43, %v865_v63  ;;  %v1510_v7 = vunpack.i.l.s16 %v821_v56  ;;  %v1512_v8 = vunpack.i.l.s16 %v823_v57  ;;  %v870_v9 = vrot.slane %v1500_v61, 7  ;;  %v1644_v57 = vld [vmem:[#allocation2 + $0x4] sm:$0xf] }
  0x53   : > { %v869_v2 = vsel %vm690_vm7, %v868_v46, %v867_v6  ;;  %v872_v12 = vrot.slane %v1502_v62, 6  ;;  %v874_v13 = vrot.slane %v1504_v0, 5  ;;  %v876_v14 = vrot.slane %v1506_v1, 4  ;;  %v1646_v46 = vld [vmem:[#allocation2 + $0x14] sm:$0xf] }
  0x54   : > { %v2038_v16 = vpack.c.b16 %v869_v2, %v869_v2  ;;  %v871_v17 = vsel %vm432_vm1, %v870_v9, %v1498_v60  ;;  %v878_v18 = vrot.slane %v1508_v3, 3  ;;  %v880_v21 = vrot.slane %v1510_v7, 2  ;;  %v1660_v61 = vld [vmem:[#allocation2 + $0x84] sm:$0xf]  ;;  %v1581_v62 = vld [vmem:[#allocation2 + $0x88] sm:$0xf0] }
  0x55   : > { %v873_v19 = vsel %vm436_vm2, %v872_v12, %v871_v17  ;;  %v1552_v22 = vor.u32 %v1652_v4, %v1549_v5  ;;  %v1616_v23 = vor.u32 %v1668_v10, %v1613_v11  ;;  %v882_v28 = vrot.slane %v1512_v8, 1  ;;  %v424_v4 = vld [vmem:[%s1972_s30 + $0x7] sm:$0x1] }
  0x56   : > { %1056 = vmatmul.bf16.vlgmr.msra.gmra.mxu2 %v2038_v16  ;;  %v875_v27 = vsel %vm440_vm3, %v874_v13, %v873_v19  ;;  %v1544_v33 = vor.u32 %v1650_v25, %v1541_v26  ;;  %v1608_v34 = vor.u32 %v1666_v29, %v1605_v30  ;;  %v667_v42 = vunpack.c.l.b16 %v2020_v53 }
  0x57   : > { %v877_v31 = vsel %vm681_vm4, %v876_v14, %v875_v27  ;;  %1077 = vmatpush.bf16.msrb.mxu0 %v1552_v22  ;;  %1090 = vmatpush.bf16.msrb.mxu1 %v1616_v23  ;;  %v1536_v44 = vor.u32 %v1648_v35, %v1533_v37  ;;  %v1600_v45 = vor.u32 %v1664_v38, %v1597_v40  ;;  %v668_v51 = vunpack.c.l.b16 %v2025_v24 }
  0x58   : > { %v652_v32 = vld [vmem:[#allocation1] sm:$0xf]  ;;  %v879_v36 = vsel %vm684_vm5, %v878_v18, %v877_v31  ;;  %v666_v52 = vunpack.c.l.b16 %v2011_v20  ;;  %v674_v54 = vrot.slane %v667_v42, 7  ;;  %v1528_v53 = vor.u32 %v1646_v46, %v1525_v47 }
  0x59   : > { %655 = vst [vmem:[#allocation1] ss:$9 sm:$0xff] %v422_v15  ;;  %v881_v39 = vsel %vm687_vm6, %v880_v21, %v879_v36  ;;  %v1592_v56 = vor.u32 %v1662_v48, %v1589_v49  ;;  %v669_v60 = vunpack.c.l.b16 %v2031_v58  ;;  %v676_v63 = vrot.slane %v668_v51, 6  ;;  %v1100_v31 = vld [vmem:[%s2152_s5] sm:$0x3] }
  0x5a   : > { %v883_v41 = vsel %vm690_vm7, %v882_v28, %v881_v39  ;;  %v675_v0 = vsel %vm432_vm1, %v674_v54, %v666_v52  ;;  %v670_v24 = vunpack.c.l.b16 %v652_v32  ;;  %v1520_v20 = vor.u32 %v1644_v57, %v1517_v59 }
  0x5b   : > { %v885_v43 = vpack.c.b16 %v883_v41, %v883_v41  ;;  %1078 = vmatpush.bf16.msrb.mxu0 %v1544_v33  ;;  %1091 = vmatpush.bf16.msrb.mxu1 %v1608_v34  ;;  %v1584_v1 = vor.u32 %v1660_v61, %v1581_v62  ;;  %v678_v3 = vrot.slane %v669_v60, 5  ;;  %v677_v5 = vsel %vm436_vm2, %v676_v63, %v675_v0 }
  0x5c   : > { %v680_v8 = vrot.slane %v670_v24, 4  ;;  %v1102_v35 = vperm.slane %v1100_v31, 0  ;;  %vm1218_vm8 = vsmask.f32 256  ;;  %vm1221_vm9 = vsmask.f32 1280 }
  0x5d   : > { %1069 = vmatmul.bf16.vlgmr.msra.gmra.mxu3 %v885_v43  ;;  %v679_v58 = vsel %vm440_vm3, %v678_v3, %v677_v5  ;;  %vm1126_vm10 = vcmask 1046528   ;;  %vm2080_vm11 = vmand %vm427_vm0, %vm1218_vm8 }
  0x5e   : > { %v682_v11 = vsel %vm681_vm4, %v680_v8, %v679_v58  ;;  %vm2086_vm12 = vmand %vm432_vm1, %vm1221_vm9 }
  0x5f   : > { %1079 = vmatpush.bf16.msrb.mxu0 %v1536_v44  ;;  %1092 = vmatpush.bf16.msrb.mxu1 %v1600_v45  ;;  %vm2096_vm13 = vmor %vm2086_vm12, %vm2080_vm11 }
  0x60   : > { %v656_v55 = vld [vmem:[#allocation1] sm:$0xf] }
  0x61   : > { %659 = vst [vmem:[#allocation1] ss:$9 sm:$0xff] %v423_v50  ;;  %v671_v6 = vunpack.c.l.b16 %v656_v55 }
  0x63   : > { %1080 = vmatpush.bf16.msrb.mxu0 %v1528_v53  ;;  %1093 = vmatpush.bf16.msrb.mxu1 %v1592_v56  ;;  %v683_v10 = vrot.slane %v671_v6, 3 }
  0x65   : > { %v685_v12 = vsel %vm684_vm5, %v683_v10, %v682_v11 }
  0x67   : > { %1081 = vmatpush.bf16.msrb.mxu0 %v1520_v20  ;;  %1094 = vmatpush.bf16.msrb.mxu1 %v1584_v1 }
  0x68   : > { %v660_v7 = vld [vmem:[#allocation1] sm:$0xf] }
  0x69   : > { %663 = vst [vmem:[#allocation1] ss:$9 sm:$0xff] %v424_v4  ;;  %v672_v9 = vunpack.c.l.b16 %v660_v7 }
  0x6b   : > { %v686_v2 = vrot.slane %v672_v9, 2 }
  0x6d   : > { %v688_v15 = vsel %vm687_vm6, %v686_v2, %v685_v12 }
  0x70   : > { %v664_v13 = vld [vmem:[#allocation1] sm:$0xf] }
  0x71   : > { %v673_v14 = vunpack.c.l.b16 %v664_v13 }
  0x73   : > { %v689_v17 = vrot.slane %v673_v14, 1 }
  0x75   : > { %v691_v18 = vsel %vm690_vm7, %v689_v17, %v688_v15 }
  0x76   : > { %v692_v19 = vpack.c.b16 %v691_v18, %v691_v18 }
  0x78   : > { %782 = vmatmul.bf16.vlgmr.msra.gmra.mxu0 %v692_v19  ;;  %795 = vmatmul.bf16.vlgmr.msra.gmra.mxu1 %v692_v19 }
  0x88   : > { %1082 = vmatmul.bf16.vlgmr.msrb.gmra.mxu0 %v2038_v16  ;;  %1095 = vmatmul.bf16.vlgmr.msrb.gmra.mxu1 %v885_v43  ;;  %v1103_v16 = vperm.slane %v1100_v31, 1  ;;  %v1230_v31 = vld [vmem:[%s2076_s12 + $0x4] sm:$0x3] }
  0xd9   : > { %v1057_v21 = vpop.f32.mrf.mxu2 }
  0xe0   : > { %v1070_v22 = vpop.f32.mrf.mxu3 }
  0xe1   : > { %v1059_v23 = vpop.f32.mrf.mxu2 }
  0xe2   : > { %v1224_v23 = vld [vmem:[%s2076_s12] sm:$0x3] }
  0xe8   : > { %v1072_v25 = vpop.f32.mrf.mxu3 }
  0xe9   : > { %v1227_v25 = vld [vmem:[%s2076_s12 + $0x2] sm:$0x3] }
  0xf5   : > { %v783_v26 = vpop.f32.mrf.mxu0  ;;  %v796_v27 = vpop.f32.mrf.mxu1 }
  0xf6   : > { %v1058_v30 = vadd.f32 %v1057_v21, %v783_v26 }
  0xf8   : > { %v1071_v34 = vadd.f32 %v1070_v22, %v1058_v30 }
  0xfa   : > { %v1106_v38 = vadd.f32 %v1102_v35, %v1071_v34 }
  0xfc   : > { %v1108_v43 = vmax.f32 %v1106_v38, 0.0 }
  0xfd   : > { %v785_v28 = vpop.f32.mrf.mxu0  ;;  %v798_v29 = vpop.f32.mrf.mxu1 }
 0x105   : > { %v1083_v32 = vpop.f32.mrf.mxu0  ;;  %v1096_v33 = vpop.f32.mrf.mxu1 }
 0x106   : > { %v1084_v36 = vadd.f32 %v1083_v32, %v796_v27 }
 0x108   : > { %v1097_v37 = vadd.f32 %v1096_v33, %v1084_v36  ;;  %v1233_v36 = vld [vmem:[%s2076_s12 + $0x6] sm:$0x3] }
 0x10a   : > { %v1107_v39 = vadd.f32 %v1103_v16, %v1097_v37 }
 0x10c   : > { %v1109_v40 = vmax.f32 %v1107_v39, 0.0 }
 0x10d   : > { %v1085_v41 = vpop.f32.mrf.mxu0  ;;  %v1098_v42 = vpop.f32.mrf.mxu1 }
 0x10e   : > { %v1112_v44 = vrot.slane %v1109_v40, 7  ;;  %v1236_v40 = vld [vmem:[%s2076_s12 + $0x8] sm:$0x3] }
 0x110   : > { %v1113_v45 = vsel %vm427_vm0, %v1108_v43, %v1112_v44  ;;  %v1114_v46 = vsel %vm432_vm1, %v1108_v43, %v1112_v44  ;;  %v1116_v47 = vsel %vm436_vm2, %v1108_v43, %v1112_v44  ;;  %v1118_v48 = vsel %vm440_vm3, %v1108_v43, %v1112_v44 }
 0x111   : > { %v1115_v49 = vrot.slane %v1114_v46, 1  ;;  %v1117_v50 = vrot.slane %v1116_v47, 2  ;;  %v1119_v51 = vrot.slane %v1118_v48, 3  ;;  %v1120_v52 = vsel %vm681_vm4, %v1108_v43, %v1112_v44  ;;  %v1242_v48 = vld [vmem:[%s2076_s12 + $0xc] sm:$0x3] }
 0x112   : > { %v1121_v54 = vrot.slane %v1120_v52, 4  ;;  %v1122_v55 = vsel %vm684_vm5, %v1108_v43, %v1112_v44  ;;  %v1124_v53 = vsel %vm687_vm6, %v1108_v43, %v1112_v44  ;;  %v1127_v56 = vsel %vm1126_vm10, %v1112_v44, %v1108_v43  ;;  %v1239_v43 = vld [vmem:[%s2076_s12 + $0xa] sm:$0x3] }
 0x113   : > { %v1123_v57 = vrot.slane %v1122_v55, 5  ;;  %v1125_v59 = vrot.slane %v1124_v53, 6  ;;  %v1128_v60 = vrot.slane %v1127_v56, 7  ;;  %v1129_v61 = vperm.slane %v1113_v45, 0 }
 0x114   : > { %v1130_v62 = vperm.slane %v1113_v45, 1  ;;  %v1131_v63 = vperm.slane %v1115_v49, 0  ;;  %v1132_v0 = vperm.slane %v1115_v49, 1  ;;  %v1133_v24 = vperm.slane %v1117_v50, 0 }
 0x115   : > { %v1134_v20 = vperm.slane %v1117_v50, 1  ;;  %v1135_v1 = vperm.slane %v1119_v51, 0  ;;  %v1136_v3 = vperm.slane %v1119_v51, 1  ;;  %v1137_v4 = vperm.slane %v1121_v54, 0  ;;  %v1245_v51 = vld [vmem:[%s2076_s12 + $0xe] sm:$0x3] }
 0x116   : > { %v1138_v6 = vperm.slane %v1121_v54, 1  ;;  %v1139_v7 = vperm.slane %v1123_v57, 0  ;;  %v1140_v8 = vperm.slane %v1123_v57, 1  ;;  %v1141_v58 = vperm.slane %v1125_v59, 0 }
 0x117   : > { %v1142_v10 = vperm.slane %v1125_v59, 1  ;;  %v1143_v11 = vperm.slane %v1128_v60, 0  ;;  %v1144_v2 = vperm.slane %v1128_v60, 1  ;;  %v1161_v12 = vpack.c.bf16 %v1130_v62, %v1129_v61 }
 0x118   : > { %v1162_v13 = vpack.c.bf16 %v1132_v0, %v1131_v63  ;;  %v1163_v14 = vpack.c.bf16 %v1134_v20, %v1133_v24  ;;  %v1164_v15 = vpack.c.bf16 %v1136_v3, %v1135_v1  ;;  %v1165_v17 = vpack.c.bf16 %v1138_v6, %v1137_v4 }
 0x119   : > { %v1166_v18 = vpack.c.bf16 %v1140_v8, %v1139_v7  ;;  %v1167_v19 = vpack.c.bf16 %v1142_v10, %v1141_v58  ;;  %v1168_v21 = vpack.c.bf16 %v1144_v2, %v1143_v11  ;;  %v1177_v22 = vrot.slane %v1161_v12, 3 }
 0x11a   : > { %v1178_v27 = vrot.slane %v1162_v13, 3  ;;  %v1179_v28 = vrot.slane %v1163_v14, 3  ;;  %v1180_v29 = vrot.slane %v1164_v15, 3  ;;  %v1181_v30 = vrot.slane %v1165_v17, 3 }
 0x11b   : > { %v1182_v32 = vrot.slane %v1166_v18, 3  ;;  %v1183_v33 = vrot.slane %v1167_v19, 3  ;;  %v1184_v34 = vrot.slane %v1168_v21, 3  ;;  %v1187_v35 = vsel %vm427_vm0, %v1161_v12, %v1177_v22 }
 0x11c   : > { %v1190_v16 = vsel %vm427_vm0, %v1162_v13, %v1178_v27  ;;  %v1193_v37 = vsel %vm427_vm0, %v1163_v14, %v1179_v28  ;;  %v1196_v38 = vsel %vm427_vm0, %v1164_v15, %v1180_v29  ;;  %v1199_v39 = vsel %vm427_vm0, %v1165_v17, %v1181_v30 }
 0x11d   : > { %v1202_v41 = vsel %vm427_vm0, %v1166_v18, %v1182_v32  ;;  %v1225_v42 = vsel %vm2096_vm13, %v1187_v35, %v1224_v23  ;;  %v1205_v44 = vsel %vm427_vm0, %v1167_v19, %v1183_v33  ;;  %v1228_v45 = vsel %vm2096_vm13, %v1190_v16, %v1227_v25 }
 0x11e   : > { %1226 = vst [vmem:[%s2076_s12] sm:$0x3] %v1225_v42  ;;  %v1231_v46 = vsel %vm2096_vm13, %v1193_v37, %v1230_v31  ;;  %v1234_v47 = vsel %vm2096_vm13, %v1196_v38, %v1233_v36  ;;  %v1208_v49 = vsel %vm427_vm0, %v1168_v21, %v1184_v34  ;;  %v1237_v50 = vsel %vm2096_vm13, %v1199_v39, %v1236_v40 }
 0x11f   : > { %1229 = vst [vmem:[%s2076_s12 + $0x2] sm:$0x3] %v1228_v45  ;;  %v1240_v52 = vsel %vm2096_vm13, %v1202_v41, %v1239_v43  ;;  %v1243_v54 = vsel %vm2096_vm13, %v1205_v44, %v1242_v48  ;;  %v1246_v55 = vsel %vm2096_vm13, %v1208_v49, %v1245_v51 }
 0x120   : > { %1232 = vst [vmem:[%s2076_s12 + $0x4] sm:$0x3] %v1231_v46 }
 0x121   : > { %1235 = vst [vmem:[%s2076_s12 + $0x6] sm:$0x3] %v1234_v47 }
 0x122   : > { %1238 = vst [vmem:[%s2076_s12 + $0x8] sm:$0x3] %v1237_v50 }
 0x123   : > { %1241 = vst [vmem:[%s2076_s12 + $0xa] sm:$0x3] %v1240_v52 }
 0x124   : > { %1244 = vst [vmem:[%s2076_s12 + $0xc] sm:$0x3] %v1243_v54 }
 0x125   : > { %1247 = vst [vmem:[%s2076_s12 + $0xe] sm:$0x3] %v1246_v55 }
 0x126 PF: > { %s18_s23 = sadd.s32 1, %s1830_s23   ;;  %s2162_s21 = smov %s1826_s22 }
 0x127   : > { %p15_p8 = scmp.ge.s32.totalorder %s18_s23, 4   ;;  %s2163_s22 = smov %s2165_s25 }
 0x129   :  { %17 = sbr.rel (!%p15_p8) target bundleno = 3 (0x3), region = 89 }
 0x12e   :  { %1286 = vsyncpa [#allocation3], 1 }
 0x12f   :  { %1288 = vsyncpa [#allocation3 + $0x1], 1 }
 0x130   :  { %1289 = vsyncpa [#allocation5], 1 }

</bundles_post_ra>
